<compile_context>
chip_gen: v6e
topology: v6e:2x2x1
jax: 0.10.0
libtpu: 0.0.40
codegen_flags: <defaults>
</compile_context>

<pallas_src>
import functools
import math

import jax
import jax.numpy as jnp
from jax import lax
from jax.experimental import pallas as pl
from jax.experimental.pallas import tpu as pltpu


# --------------------------------------------------------------------------
# Kernel
# --------------------------------------------------------------------------
def _arc_margin_kernel(x_ref, w_ref, inv_x_ref, inv_ws_ref, label_ref, o_ref, *,
                       s, inv_s, cos_m, sin_m, th, mm, easy_margin, block_n):
    j = pl.program_id(1)                                   # N-tile index

    # Raw bf16 MXU matmul, f32 accumulation: [tb, D] @ [D, tn] -> [tb, tn].
    raw = jnp.dot(x_ref[...], w_ref[...], preferred_element_type=jnp.float32)

    # s * cosine == raw * (1/||x||) * (s/||w||)   (s folded into inv_ws).
    scaled = raw * inv_x_ref[...] * inv_ws_ref[...]        # [tb, tn]

    # One-hot mask vs. the *local* column index: subtract the tile offset on
    # the [tb,1] label rather than adding it to the [tb,tn] iota.
    tb, tn = scaled.shape
    col = lax.broadcasted_iota(jnp.int32, (tb, tn), 1)
    mask = col == (label_ref[...] - j * block_n)           # [tb, tn]

    # The margin is only needed at the label column: extract it per row and do
    # all sqrt / threshold work on a [tb, 1] slice instead of the full tile.
    scaled_lab = jnp.sum(jnp.where(mask, scaled, 0.0), axis=-1, keepdims=True)
    cos_lab = scaled_lab * inv_s                           # [tb, 1] unscaled cosine
    sin_lab = jnp.sqrt(jnp.maximum(1.0 - cos_lab * cos_lab, 0.0))
    phi = cos_lab * cos_m - sin_lab * sin_m
    if easy_margin:
        phi = jnp.where(cos_lab > 0.0, phi, cos_lab)
    else:
        phi = jnp.where(cos_lab - th > 0.0, phi, cos_lab - mm)

    out = jnp.where(mask, phi * s, scaled)                 # [tb, tn]
    o_ref[...] = out.astype(o_ref.dtype)


# --------------------------------------------------------------------------
# Tile selection under an explicit VMEM budget
# --------------------------------------------------------------------------
def _round_up(x, m):
    return ((x + m - 1) // m) * m


def _vmem_estimate(tb, tn, d, out_bytes):
    db = 2  # BlockSpec double-buffering
    return (db * (tb * d * 2                     # x tile (bf16)
                  + d * tn * 2                   # w tile (bf16)
                  + tb * tn * out_bytes          # output tile
                  + tb * 4 + tb * 4 + tn * 4)    # inv_x, label, inv_ws
            + 4 * tb * tn * 4)                   # f32 epilogue temporaries headroom


def _pick_tiles(B, N, D, out_bytes, budget_bytes, max_tb, max_tn):
    b_al = _round_up(B, 16)                      # 16-sublane alignment (bf16-safe)
    n_al = _round_up(N, 128)                     # lane-dense output tiles
    tb = min(b_al, max(16, _round_up(max_tb, 16)))
    tn = min(n_al, max(128, _round_up(max_tn, 128)))
    # Shrink under the VMEM budget, preferring to keep tb large (weight is
    # re-streamed B/tb times, so tb is the HBM-traffic lever).
    while _vmem_estimate(tb, tn, D, out_bytes) > budget_bytes:
        if tn > 512:
            tn = max(128, (tn // 2) // 128 * 128)
        elif tb > 16:
            tb = max(16, (tb // 2) // 16 * 16)
        elif tn > 128:
            tn = max(128, (tn // 2) // 128 * 128)
        else:
            break   # minimum tiles; rely on vmem_limit_bytes headroom
    # TODO(synk): for very large in_features add a K grid axis instead of
    # holding the full D extent per tile.
    return tb, tn


# --------------------------------------------------------------------------
# Wrapper
# --------------------------------------------------------------------------
def arc_margin_forward(x, weight, label, *, s=32.0, m=0.5, easy_margin=False,
                       sub=1, block_b=512, block_n=2048,
                       out_dtype=jnp.float32,
                       vmem_budget_bytes=32 * 1024 * 1024):
    """x: [B, D], weight: [N, D], label: [B] int -> [B, N] (ArcFace logits)."""
    # TODO(synk): sub > 1 path (view(-1, out_features, sub) + max over sub) not
    # implemented; the PyTorch module default is sub=1.
    assert sub == 1, "sub > 1 not implemented"
    B, D = x.shape
    N, D2 = weight.shape
    assert D == D2

    # ---- One-time prep (plain XLA; cache these in a real deployment) -------
    x32 = x.astype(jnp.float32)
    w32 = weight.astype(jnp.float32)
    inv_x = lax.rsqrt(jnp.maximum(jnp.sum(x32 * x32, axis=1, keepdims=True),
                                  1e-24))                               # [B, 1]
    inv_ws = (float(s) * lax.rsqrt(
        jnp.maximum(jnp.sum(w32 * w32, axis=1), 1e-24))).reshape(1, N)  # [1, N]
    x_bf = x32.astype(jnp.bfloat16)             # halves x DMA; MXU operand anyway
    w_t = w32.T.astype(jnp.bfloat16)            # [D, N]: lane axis = N, no vxpose
    label2d = label.reshape(B, 1).astype(jnp.int32)

    # ---- Tile selection + padding to tile multiples ------------------------
    out_bytes = jnp.dtype(out_dtype).itemsize
    tb, tn = _pick_tiles(B, N, D, out_bytes, vmem_budget_bytes, block_b, block_n)
    B_pad = _round_up(B, tb)
    N_pad = _round_up(N, tn)
    if B_pad != B:
        x_bf = jnp.pad(x_bf, ((0, B_pad - B), (0, 0)))
        inv_x = jnp.pad(inv_x, ((0, B_pad - B), (0, 0)))
        label2d = jnp.pad(label2d, ((0, B_pad - B), (0, 0)))
    if N_pad != N:
        w_t = jnp.pad(w_t, ((0, 0), (0, N_pad - N)))
        inv_ws = jnp.pad(inv_ws, ((0, 0), (0, N_pad - N)))

    grid = (B_pad // tb, N_pad // tn)
    vmem_limit = min(max(48 * 1024 * 1024,
                         _vmem_estimate(tb, tn, D, out_bytes) + 16 * 1024 * 1024),
                     112 * 1024 * 1024)

    kernel = functools.partial(
        _arc_margin_kernel,
        s=float(s), inv_s=1.0 / float(s),
        cos_m=math.cos(m), sin_m=math.sin(m),
        th=math.cos(math.pi - m), mm=math.sin(math.pi - m) * m,
        easy_margin=easy_margin, block_n=tn)

    out = pl.pallas_call(
        kernel,
        out_shape=jax.ShapeDtypeStruct((B_pad, N_pad), out_dtype),
        grid_spec=pltpu.PrefetchScalarGridSpec(
            num_scalar_prefetch=0,
            grid=grid,
            in_specs=[
                pl.BlockSpec((tb, D), lambda i, j: (i, 0)),   # x tile (bf16), reused over j
                pl.BlockSpec((D, tn), lambda i, j: (0, j)),   # streamed w^T tile (bf16)
                pl.BlockSpec((tb, 1), lambda i, j: (i, 0)),   # 1/||x||  (f32)
                pl.BlockSpec((1, tn), lambda i, j: (0, j)),   # s/||w||  (f32)
                pl.BlockSpec((tb, 1), lambda i, j: (i, 0)),   # labels (int32)
            ],
            out_specs=pl.BlockSpec((tb, tn), lambda i, j: (i, j)),
        ),
        compiler_params=pltpu.CompilerParams(
            # No cross-tile carries -> both axes independent (megacore on v7x).
            dimension_semantics=("parallel", "parallel"),
            vmem_limit_bytes=vmem_limit,
        ),
    )(x_bf, w_t, inv_x, inv_ws, label2d)

    if B_pad != B or N_pad != N:
        out = out[:B, :N]
    return out


# --------------------------------------------------------------------------
# References
# --------------------------------------------------------------------------
def _margin_tail(cosine, label, *, s, m, easy_margin):
    sine = jnp.sqrt(jnp.maximum(1.0 - cosine ** 2, 0.0))
    phi = cosine * math.cos(m) - sine * math.sin(m)
    th = math.cos(math.pi - m)
    mm = math.sin(math.pi - m) * m
    if easy_margin:
        phi = jnp.where(cosine > 0, phi, cosine)
    else:
        phi = jnp.where(cosine - th > 0, phi, cosine - mm)
    one_hot = jax.nn.one_hot(label, cosine.shape[1], dtype=jnp.float32)
    return (one_hot * phi + (1.0 - one_hot) * cosine) * s


def _reference_matched(x, weight, label, *, s=32.0, m=0.5, easy_margin=False):
    """Same operand dtypes as the kernel: bf16 matmul operands, f32 norms."""
    x32 = x.astype(jnp.float32)
    w32 = weight.astype(jnp.float32)
    xb = x32.astype(jnp.bfloat16).astype(jnp.float32)
    wb = w32.astype(jnp.bfloat16).astype(jnp.float32)
    raw = jnp.dot(xb, wb.T, precision=lax.Precision.HIGHEST)
    inv_x = lax.rsqrt(jnp.maximum(jnp.sum(x32 * x32, axis=1, keepdims=True), 1e-24))
    inv_w = lax.rsqrt(jnp.maximum(jnp.sum(w32 * w32, axis=1, keepdims=True), 1e-24))
    cosine = raw * inv_x * inv_w.T
    return _margin_tail(cosine, label, s=s, m=m, easy_margin=easy_margin)


def _reference_f32(x, weight, label, *, s=32.0, m=0.5, easy_margin=False):
    """All-f32 PyTorch-equivalent reference (sub=1)."""
    eps = 1e-12
    xn = x / jnp.maximum(jnp.linalg.norm(x, axis=1, keepdims=True), eps)
    wn = weight / jnp.maximum(jnp.linalg.norm(weight, axis=1, keepdims=True), eps)
    cosine = jnp.dot(xn, wn.T, precision=lax.Precision.HIGHEST)
    return _margin_tail(cosine, label, s=s, m=m, easy_margin=easy_margin)


# --------------------------------------------------------------------------
# Demo / test
# --------------------------------------------------------------------------
if __name__ == "__main__":
    # Module defaults: in_features=128, out_features=200 (N not a multiple of
    # 128 -> exercises the padding path), sub=1, s=32, m=0.5.
    in_features = 128
    out_features = 200
    sub = 1
    s_, m_ = 32.0, 0.5
    B = 32

    key = jax.random.PRNGKey(0)
    kx, kw, kl = jax.random.split(key, 3)

    x = jax.random.normal(kx, (B, in_features), dtype=jnp.float32)
    # Deterministic xavier_uniform_-style init for weight [out*sub, in].
    fan_out, fan_in = out_features * sub, in_features
    bound = math.sqrt(6.0 / (fan_in + fan_out))
    weight = jax.random.uniform(kw, (fan_out, fan_in), minval=-bound, maxval=bound,
                                dtype=jnp.float32)
    label = jax.random.randint(kl, (B,), 0, out_features, dtype=jnp.int32)

    # 1) Small explicit tiles -> grid (2, 2), N padded 200 -> 256.
    out_small = arc_margin_forward(x, weight, label, s=s_, m=m_, easy_margin=False,
                                   block_b=16, block_n=128)
    out_small = jax.block_until_ready(out_small)
    assert out_small.shape == (B, out_features)

    # 2) Default (large) tile path -> single grid step.
    out_big = arc_margin_forward(x, weight, label, s=s_, m=m_, easy_margin=False)
    out_big = jax.block_until_ready(out_big)
    assert out_big.shape == (B, out_features)

    ref_m = _reference_matched(x, weight, label, s=s_, m=m_, easy_margin=False)
    ref_f = _reference_f32(x, weight, label, s=s_, m=m_, easy_margin=False)
    for out in (out_small, out_big):
        # Tight check vs a reference using identical bf16 operands.
        assert jnp.allclose(out, ref_m, atol=5e-3, rtol=5e-4), \
            "mismatch vs matched reference"
        # Loose sanity check vs the all-f32 PyTorch-equivalent reference
        # (differences come only from bf16 MXU operands).
        assert jnp.allclose(out, ref_f, atol=1e-1, rtol=2e-2), \
            "mismatch vs f32 reference"

    print("KERNEL_OK")
</pallas_src>

<mosaic_0001>
module attributes {stable_mosaic.version = 11 : i64} {
  func.func @_arc_margin_kernel(%arg0: i32, %arg1: i32, %arg2: memref<16x128xbf16, #tpu.memory_space<vmem>>, %arg3: memref<128x128xbf16, #tpu.memory_space<vmem>>, %arg4: memref<16x1xf32, #tpu.memory_space<vmem>>, %arg5: memref<1x128xf32, #tpu.memory_space<vmem>>, %arg6: memref<16x1xi32, #tpu.memory_space<vmem>>, %arg7: memref<16x128xf32, #tpu.memory_space<vmem>>) attributes {dimension_semantics = [#tpu.dimension_semantics<parallel>, #tpu.dimension_semantics<parallel>], iteration_bounds = array<i64: 2, 2>, scalar_prefetch = 0 : i64, scratch_operands = 0 : i64, tpu.core_type = #tpu.core_type<tc>, window_params = [{transform_indices = @transform_0, window_bounds = array<i64: 16, 128>}, {transform_indices = @transform_1, window_bounds = array<i64: 128, 128>}, {transform_indices = @transform_2, window_bounds = array<i64: 16, 1>}, {transform_indices = @transform_3, window_bounds = array<i64: 1, 128>}, {transform_indices = @transform_4, window_bounds = array<i64: 16, 1>}, {transform_indices = @transform_5, window_bounds = array<i64: 16, 128>}]} {
    %c0 = arith.constant 0 : index
    %c0_0 = arith.constant 0 : index
    %0 = vector.load %arg2[%c0, %c0_0] : memref<16x128xbf16, #tpu.memory_space<vmem>>, vector<16x128xbf16>
    %c0_1 = arith.constant 0 : index
    %c0_2 = arith.constant 0 : index
    %1 = vector.load %arg3[%c0_1, %c0_2] : memref<128x128xbf16, #tpu.memory_space<vmem>>, vector<128x128xbf16>
    %cst = arith.constant dense<0.000000e+00> : vector<16x128xf32>
    %2 = tpu.matmul %0, %1, %cst {dimension_numbers = #tpu.dot_dimension_numbers<[1], [0], [0], [1], [0, 0, 1, 1], [], []>} : vector<16x128xbf16>, vector<128x128xbf16>, vector<16x128xf32> -> vector<16x128xf32>
    %c0_3 = arith.constant 0 : index
    %c0_4 = arith.constant 0 : index
    %3 = vector.load %arg4[%c0_3, %c0_4] : memref<16x1xf32, #tpu.memory_space<vmem>>, vector<16x1xf32>
    %4 = vector.broadcast %3 : vector<16x1xf32> to vector<16x128xf32>
    %5 = arith.mulf %2, %4 : vector<16x128xf32>
    %c0_5 = arith.constant 0 : index
    %c0_6 = arith.constant 0 : index
    %6 = vector.load %arg5[%c0_5, %c0_6] : memref<1x128xf32, #tpu.memory_space<vmem>>, vector<1x128xf32>
    %7 = vector.broadcast %6 : vector<1x128xf32> to vector<16x128xf32>
    %8 = arith.mulf %5, %7 : vector<16x128xf32>
    %9 = tpu.iota {dimensions = array<i32: 1>} : vector<16x128xi32>
    %c0_7 = arith.constant 0 : index
    %c0_8 = arith.constant 0 : index
    %10 = vector.load %arg6[%c0_7, %c0_8] : memref<16x1xi32, #tpu.memory_space<vmem>>, vector<16x1xi32>
    %c128_i32 = arith.constant 128 : i32
    %11 = arith.muli %arg1, %c128_i32 : i32
    %12 = vector.broadcast %11 : i32 to vector<16x1xi32>
    %13 = arith.subi %10, %12 : vector<16x1xi32>
    %14 = vector.broadcast %13 : vector<16x1xi32> to vector<16x128xi32>
    %15 = arith.cmpi eq, %9, %14 : vector<16x128xi32>
    %cst_9 = arith.constant 0.000000e+00 : f32
    %16 = vector.broadcast %cst_9 : f32 to vector<16x128xf32>
    %17 = arith.select %15, %8, %16 : vector<16x128xi1>, vector<16x128xf32>
    %cst_10 = arith.constant dense<0.000000e+00> : vector<16xf32>
    %18 = vector.multi_reduction <add>, %17, %cst_10 [1] : vector<16x128xf32> to vector<16xf32>
    %19 = vector.shape_cast %18 : vector<16xf32> to vector<16x1xf32>
    %cst_11 = arith.constant 3.125000e-02 : f32
    %20 = vector.broadcast %cst_11 : f32 to vector<16x1xf32>
    %21 = arith.mulf %19, %20 : vector<16x1xf32>
    %22 = arith.mulf %21, %21 : vector<16x1xf32>
    %cst_12 = arith.constant 1.000000e+00 : f32
    %23 = vector.broadcast %cst_12 : f32 to vector<16x1xf32>
    %24 = arith.subf %23, %22 : vector<16x1xf32>
    %cst_13 = arith.constant 0.000000e+00 : f32
    %25 = vector.broadcast %cst_13 : f32 to vector<16x1xf32>
    %26 = arith.maximumf %24, %25 : vector<16x1xf32>
    %27 = math.sqrt %26 : vector<16x1xf32>
    %cst_14 = arith.constant 0.87758255 : f32
    %28 = vector.broadcast %cst_14 : f32 to vector<16x1xf32>
    %29 = arith.mulf %21, %28 : vector<16x1xf32>
    %cst_15 = arith.constant 0.47942555 : f32
    %30 = vector.broadcast %cst_15 : f32 to vector<16x1xf32>
    %31 = arith.mulf %27, %30 : vector<16x1xf32>
    %32 = arith.subf %29, %31 : vector<16x1xf32>
    %cst_16 = arith.constant -0.87758255 : f32
    %33 = vector.broadcast %cst_16 : f32 to vector<16x1xf32>
    %34 = arith.subf %21, %33 : vector<16x1xf32>
    %cst_17 = arith.constant 0.000000e+00 : f32
    %35 = vector.broadcast %cst_17 : f32 to vector<16x1xf32>
    %36 = arith.cmpf ogt, %34, %35 : vector<16x1xf32>
    %cst_18 = arith.constant 0.239712775 : f32
    %37 = vector.broadcast %cst_18 : f32 to vector<16x1xf32>
    %38 = arith.subf %21, %37 : vector<16x1xf32>
    %39 = arith.select %36, %32, %38 : vector<16x1xi1>, vector<16x1xf32>
    %cst_19 = arith.constant 3.200000e+01 : f32
    %40 = vector.broadcast %cst_19 : f32 to vector<16x1xf32>
    %41 = arith.mulf %39, %40 : vector<16x1xf32>
    %42 = vector.shape_cast %41 : vector<16x1xf32> to vector<16x1xf32>
    %43 = vector.broadcast %42 : vector<16x1xf32> to vector<16x128xf32>
    %44 = arith.select %15, %43, %8 : vector<16x128xi1>, vector<16x128xf32>
    %c0_20 = arith.constant 0 : index
    %c0_21 = arith.constant 0 : index
    %45 = vector.load %arg7[%c0_20, %c0_21] : memref<16x128xf32, #tpu.memory_space<vmem>>, vector<16x128xf32>
    tpu.vector_store %arg7[%c0_20, %c0_21], %44 {strides = array<i32>} : memref<16x128xf32, #tpu.memory_space<vmem>>, vector<16x128xf32>,
    return
  }
  func.func @transform_0(%arg0: i32, %arg1: i32) -> (i32, i32) {
    %c0_i32 = arith.constant 0 : i32
    %c0_i32_0 = arith.constant 0 : i32
    return %arg0, %c0_i32 : i32, i32
  }
  func.func @transform_1(%arg0: i32, %arg1: i32) -> (i32, i32) {
    %c0_i32 = arith.constant 0 : i32
    %c0_i32_0 = arith.constant 0 : i32
    return %c0_i32, %arg1 : i32, i32
  }
  func.func @transform_2(%arg0: i32, %arg1: i32) -> (i32, i32) {
    %c0_i32 = arith.constant 0 : i32
    %c0_i32_0 = arith.constant 0 : i32
    return %arg0, %c0_i32 : i32, i32
  }
  func.func @transform_3(%arg0: i32, %arg1: i32) -> (i32, i32) {
    %c0_i32 = arith.constant 0 : i32
    %c0_i32_0 = arith.constant 0 : i32
    return %c0_i32, %arg1 : i32, i32
  }
  func.func @transform_4(%arg0: i32, %arg1: i32) -> (i32, i32) {
    %c0_i32 = arith.constant 0 : i32
    %c0_i32_0 = arith.constant 0 : i32
    return %arg0, %c0_i32 : i32, i32
  }
  func.func @transform_5(%arg0: i32, %arg1: i32) -> (i32, i32) {
    %c0_i32 = arith.constant 0 : i32
    return %arg0, %arg1 : i32, i32
  }
}

</mosaic_0001>

<bundles_post_ra>
// kernel: tpu_custom_call.1
= control target key start
LH: loop header
LB: loop body
LE: loop exit
PB: predicated region body
PF: predicated region fallthrough
CT: control target
= control target key end

     0   :  { %10 = vsyncpa [#allocation3], 0  ;;  %s1306_s0 = inlined_call_operand.vmem [shape: bf16[32,128], index: 0, kind: input, shape index: {}]   ;;  %s1307_s1 = inlined_call_operand.hbm [shape: bf16[128,256], index: 1, kind: input, shape index: {}]   ;;  %s1308_s2 = inlined_call_operand.vmem [shape: f32[32,1], index: 2, kind: input, shape index: {}]   ;;  %s1309_s3 = inlined_call_operand.vmem [shape: f32[1,256], index: 3, kind: input, shape index: {}]   ;;  %s1310_s4 = inlined_call_operand.vmem [shape: s32[32,1], index: 4, kind: input, shape index: {}]   ;;  %s1311_s5 = inlined_call_operand.hbm [shape: f32[32,256], index: 5, kind: output, shape index: {}]  }
   0x1   :  { %12 = vsyncpa [#allocation3 + $0x1], 0 }
   0x2   :  { %13 = vsyncpa [#allocation4], 0 }
   0x3   :  { %15 = vsyncpa [#allocation4 + $0x1], 0  ;;  %s1068_s18 = smov 0   ;;  %s1070_s19 = smov 0  }
   0x4   :  { %s1072_s20 = smov 0   ;;  %s1074_s21 = smov 0  }
   0x5   :  { %s1076_s22 = smov 0   ;;  %s1078_s23 = smov 0  }
   0x6   :  { %s1080_s24 = smov 0   ;;  %s1082_s25 = smov 0  }
   0x7   :  { %s1084_s26 = smov 0   ;;  %s1086_s27 = smov 0  }
   0x8   :  { %s1088_s28 = smov 0  }
   0x9 LB: > { %1317 = sst [smem:[#allocation8_spill]] %s1005_s23  ;;  %s685_s29 = sadd.s32 4294967295, %s1025_s28   ;;  %s1025_s28 = sphi %s1088_s28, %s21_s28   ;;  %s1021_s27 = sphi %s1086_s27, %s1333_s27   ;;  %s1017_s26 = sphi %s1084_s26, %s1332_s26   ;;  %s1013_s25 = sphi %s1082_s25, %s1331_s25   ;;  %s1009_s24 = sphi %s1080_s24, %s1330_s24   ;;  %s1005_s23 = sphi %s1078_s23, %s1329_s23   ;;  %s1001_s22 = sphi %s1076_s22, %s1338_s22   ;;  %s997_s21 = sphi %s1074_s21, %s1337_s21   ;;  %s993_s20 = sphi %s1072_s20, %s1336_s20   ;;  %s989_s19 = sphi %s1070_s19, %s1335_s19   ;;  %s985_s18 = sphi %s1068_s18, %s1334_s18  }
   0xa   : > { %1318 = sst [smem:[#allocation9_spill]] %s1017_s26  ;;  %s686_s30 = sadd.s32 4294967294, %s1025_s28  }
   0xb   : > { %1319 = sst [smem:[#allocation10_spill]] %s1021_s27  ;;  %s30_s6 = sadd.s32 1, %s1017_s26 }
   0xc   : > { %s33_s7 = sadd.s32 1, %s1021_s27  ;;  %p31_p0 = scmp.ge.s32.totalorder %s30_s6, 2 }
   0xd   : > { %s66_s8 = sadd.s32 1, %s1005_s23  ;;  %p73_p1 = scmp.ne.s32.totalorder %s1005_s23, %s1001_s22 }
   0xe   : > { %p74_p2 = scmp.eq.s32.totalorder %s1025_s28, 0  ;;  %s1340_s6 = smov (%p31_p0, %s30_s6), 0 }
   0xf   : > { %1320 = sst [smem:[#allocation11_spill]] %s1340_s6  ;;  %s1342_s7 = smov (!%p31_p0, %s33_s7), %s1021_s27 }
  0x10   : > { %s63_s9 = ssub.s32 %s1017_s26, %s1340_s6  ;;  %p1134_p3 = por %p74_p2, %p73_p1 }
  0x11   : > { %p35_p4 = scmp.ge.s32.totalorder %s1342_s7, 2  ;;  %p64_p5 = scmp.eq.s32.totalorder %s63_s9, 0 }
  0x12   : > { %p79_p6 = scmp.ne.s32.totalorder %s1001_s22, %s997_s21  ;;  %p80_p7 = scmp.eq.s32.totalorder %s685_s29, 0 }
  0x13   : > { %s1344_s7 = smov (%p35_p4, %s1342_s7), 0  ;;  %s172_s15 = sadd.s32 1, %s993_s20 }
  0x14   : > { %1322 = sst [smem:[#allocation12_spill]] %s1344_s7  ;;  %p1144_p8 = por %p80_p7, %p79_p6 }
  0x15   : > { %s1142_s11 = scalar_select %p64_p5, %s1005_s23, %s66_s8  }
  0x16   : > { %s167_s13 = ssub.s32 %s1021_s27, %s1344_s7  ;;  %p182_p10 = scmp.ne.s32.totalorder %s993_s20, %s989_s19 }
  0x17   : > { %1323 = sst [smem:[#allocation13_spill]] %s1142_s11  ;;  %s169_s14 = sor.u32 %s167_s13, %s63_s9 }
  0x18   : > { %p170_p9 = scmp.eq.s32.totalorder %s169_s14, 0  ;;  %p183_p11 = scmp.eq.s32.totalorder %s685_s29, 3 }
  0x19   : > { %p188_p12 = scmp.ne.s32.totalorder %s989_s19, %s985_s18  ;;  %p189_p0 = scmp.eq.s32.totalorder %s686_s30, 3 }
  0x1a   : > { %s1156_s16 = scalar_select %p170_p9, %s993_s20, %s172_s15  }
  0x1b   : > { %p1158_p13 = por %p183_p11, %p182_p10  ;;  %p763_p1 = scmp.lt.s32.totalorder %s1025_s28, 4 }
  0x1c   : > { %p1163_p2 = por %p189_p0, %p188_p12  ;;  %s218_s8 = sand.u32 1, %s1005_s23  }
  0x1d   : > { %s689_s9 = sshll.u32 %s218_s8, 6  ;;  %s690_s13 = sshll.u32 %s1017_s26, 6 }
  0x1e   : > { %s227_s29 = scalar_lea.hbm %s1307_s1, %s690_s13  ;;  %s222_s6 = scalar_lea.vmem [#allocation2], %s689_s9 }
  0x1f   : > { %s228_s15 = sshll.u32 %s222_s6, 4  ;;  %p1174_p4 = pnand %p763_p1, %p1134_p3  ;;  %s229_s15 = int_to_ptr.vmem [resolvable:$true] %s228_s15 }
  0x20   : > { %s219_s30 = scalar_lea.sflag [#allocation3], %s218_s8  ;;  %s890_s11 = scalar_lea.vmem %s229_s15, 1024 }
  0x21   : > { %p879_p5 = pneg %p1174_p4  ;;  %p891_p6 = scmp.ne.s32.totalorder %s229_s15, %s890_s11 }
  0x22   : > { %s1027_s26 = smov [#allocation2]  }
  0x23   : > { %p893_p7 = pnand %p891_p6, %p879_p5  ;;  %s895_s23 = sshll.u32 %s1027_s26, 4  ;;  %s896_s23 = int_to_ptr.vmem [resolvable:$false] %s895_s23 }
  0x24   : > { %s897_s7 = scalar_lea.vmem %s896_s23, 2048  ;;  %p898_p10 = scmp.lt.s32.totalorder %s229_s15, %s896_s23 }
  0x25   : > { %p894_p9 = pneg %p893_p7  ;;  %p899_p11 = scmp.lt.s32.totalorder %s897_s7, %s890_s11 }
  0x27   : > { %p900_p12 = por %p899_p11, %p898_p10 }
  0x29   : > { %p901_p0 = pnand %p900_p12, %p894_p9 }
  0x2b   : > { %904 = shalt.err (!%p901_p0)
}
  0x2c   : > { %s1028_s6 = smov 128   ;;  %s1029_s10 = smov 64  }
  0x2d   : > { %s1030_s8 = smov 4   ;;  %p691_p3 = scmp.ge.s32.totalorder %s1025_s28, 1 }
  0x2e   : > { %758 = dma.hbm_to_vmem [thread:$0]  (!%p1174_p4), %s227_s29, 1024, %s229_s15, %s219_s30, %s1028_s6, %s1029_s10, %s1030_s8  }
  0x2f   : > { %p260_p1 = scmp.lt.s32.totalorder %s1025_s28, 5 }
  0x31   : > { %p261_p5 = pnand %p691_p3, %p260_p1 }
  0x32   : > { %s266_s26 = sand.u32 (!%p261_p5), 1, %s1001_s22  }
  0x33   : > { %264 = sbr.rel (%p261_p5) target bundleno = 480 (0x1e0), region = 40  ;;  %s692_s23 = sshll.u32 (!%p261_p5), %s266_s26, 6 }
  0x34   : > { %s267_s11 = scalar_lea.sflag (!%p261_p5), [#allocation3], %s266_s26  ;;  %s1185_s9 = scalar_lea.vmem (!%p261_p5), [#allocation2], %s692_s23 }
  0x38   : > { %976 = dma.done.wait (%p1144_p8), %s267_s11, 1024  }
  0x39   : > { %978 = vsyncadd (%p1144_p8), %s267_s11, 4294966272  ;;  %s694_s27 = sshll.u32 %s1013_s25, 1  ;;  %v1031_v0 = vmov 0.0   ;;  %vm1032_vm0 = vmmov 0   ;;  %v1033_v1 = vmov 0   ;;  %v864_v2 = vld [vmem:[%s1185_s9 + $0x38] sm:$0xff]   ;;  %v474_v18 = vlaneseq }
  0x3a   : > { %731 = vmatprep.subr.bf16.mxu0 %v1031_v0  ;;  %747 = vmatprep.mubr.msk.bf16.mxu0 %vm1032_vm0, %v1031_v0  ;;  %p316_p4 = scmp.lt.s32.totalorder %s694_s27, 3  ;;  %v865_v3 = vld [vmem:[%s1185_s9 + $0x30] sm:$0xff]   ;;  %s710_s14 = sshll.u32 %s1009_s24, 7  ;;  %v866_v4 = vld [vmem:[%s1185_s9 + $0x28] sm:$0xff]   ;;  %v867_v9 = vld [vmem:[%s1185_s9 + $0x20] sm:$0xff]  }
  0x3b   : > { %862 = vset.pattern.permute.xlu0 %v1033_v1  ;;  %863 = vset.pattern.permute.xlu1 %v1033_v1  ;;  %v479_v5 = vstv %s710_s14  ;;  %v868_v13 = vld [vmem:[%s1185_s9 + $0x18] sm:$0xff]   ;;  %v869_v14 = vld [vmem:[%s1185_s9 + $0x10] sm:$0xff]   ;;  %v870_v15 = vld [vmem:[%s1185_s9 + $0x8] sm:$0xff]   ;;  %p327_p8 = scmp.lt.s32.totalorder %s1009_s24, 1  ;;  %v1215_v20 = vand.u32 127, %v474_v18  ;;  %s721_s14 = sshll.u32 %s1013_s25, 2 }
  0x3c   : > { %s1346_s27 = smov (!%p316_p4, %s694_s27), 3  ;;  %732 = vmatpush3.bf16.msra.mxu0 %v864_v2  ;;  %v871_v16 = vld [vmem:[%s1185_s9] sm:$0xff]   ;;  %s312_s9 = sand.u32 1, %s989_s19  }
  0x3d   : > { %733 = vmatprep.subr.bf16.mxu0 %v1031_v0  ;;  %s697_s12 = sshll.u32 %s1346_s27, 3  ;;  %s695_s13 = sshll.u32 %s1346_s27, 2 }
  0x3e   : > { %s325_s30 = scalar_lea.vmem %s1308_s2, %s697_s12  ;;  %s334_s10 = scalar_lea.vmem %s1310_s4, %s697_s12 }
  0x3f   : > { %s319_s23 = scalar_lea.vmem %s1306_s0, %s695_s13  ;;  %v451_v6 = vld [vmem:[%s325_s30] sm:$0xff]  ;;  %v477_v8 = vld [vmem:[%s334_s10 + $0x8] sm:$0xff]  ;;  %s693_s29 = sshll.u32 %s312_s9, 4 }
  0x40   : > { %734 = vmatpush3.bf16.msra.mxu0 %v865_v3  ;;  %v476_v7 = vld [vmem:[%s334_s10] sm:$0xff]  ;;  %455 = vperm.xlu0 %862, %v451_v6   ;;  %v452_v11 = vld [vmem:[%s325_s30 + $0x8] sm:$0xff]  ;;  %v481_v12 = vsub.s32 %v477_v8, %v479_v5  ;;  %s328_s11 = scalar_select %p327_p8, %s1009_s24, 1 }
  0x41   : > { %735 = vmatprep.subr.bf16.mxu0 %v1031_v0  ;;  %v480_v10 = vsub.s32 %v476_v7, %v479_v5  ;;  %v872_v17 = vld [vmem:[%s319_s23] sm:$0xff]   ;;  %s551_s15 = sadd.s32 %s1009_s24, %s721_s14  ;;  %s314_s25 = scalar_lea.vmem [#allocation5], %s693_s29 }
  0x42   : > { %s329_s13 = scalar_lea.vmem %s1309_s3, %s328_s11  ;;  %s718_s30 = sshll.u32 %s551_s15, 7 }
  0x43   : > { %483 = vperm.xlu1 %863, %v480_v10   ;;  %v709_v23 = vld [vmem:[%s329_s13] ss:$0 sm:$0xff]  ;;  %s554_s7 = sshll.u32 %s314_s25, 4  ;;  %s1237_s10 = scalar_lea.hbm %s1311_s5, %s718_s30  ;;  %s1239_s7 = int_to_ptr.vmem [resolvable:$true] %s554_s7 }
  0x44   : > { %736 = vmatpush3.bf16.msra.mxu0 %v866_v4  ;;  %460 = vperm.xlu0 %862, %v452_v11   ;;  %s1246_s8 = scalar_lea.sflag [#allocation4], %s312_s9  ;;  %s905_s26 = scalar_lea.vmem %s1239_s7, 256 }
  0x45   : > { %737 = vmatprep.subr.bf16.mxu0 %v1031_v0  ;;  %p906_p6 = scmp.ne.s32.totalorder %s1239_s7, %s905_s26  ;;  %s1034_s23 = smov [#allocation5]  }
  0x46   : > { %s909_s11 = sshll.u32 %s1034_s23, 4  ;;  %s910_s11 = int_to_ptr.vmem [resolvable:$false] %s909_s11 }
  0x47   : > { %486 = vperm.xlu1 %863, %v481_v12   ;;  %p907_p7 = pnand %p906_p6, %p1158_p13  ;;  %s911_s27 = scalar_lea.vmem %s910_s11, 512 }
  0x48   : > { %738 = vmatpush3.bf16.msra.mxu0 %v867_v9  ;;  %p912_p10 = scmp.lt.s32.totalorder %s1239_s7, %s910_s11  ;;  %p913_p11 = scmp.lt.s32.totalorder %s911_s27, %s905_s26 }
  0x49   : > { %739 = vmatprep.subr.bf16.mxu0 %v1031_v0  ;;  %p908_p9 = pneg %p907_p7 }
  0x4a   : > { %p914_p12 = por %p913_p11, %p912_p10 }
  0x4c   : > { %740 = vmatpush3.bf16.msra.mxu0 %v868_v13  ;;  %p915_p0 = pnand %p914_p12, %p908_p9 }
  0x4d   : > { %741 = vmatprep.subr.bf16.mxu0 %v1031_v0 }
  0x50   : > { %742 = vmatpush3.bf16.msra.mxu0 %v869_v14 }
  0x51   : > { %743 = vmatprep.subr.bf16.mxu0 %v1031_v0 }
  0x54   : > { %744 = vmatpush3.bf16.msra.mxu0 %v870_v15 }
  0x55   : > { %745 = vmatprep.subr.bf16.mxu0 %v1031_v0 }
  0x58   : > { %746 = vmatpush3.bf16.msra.mxu0 %v871_v16 }
  0x5b   : > { %748 = vmatmul.mubr.bf16.vlgmr.msra.gmra.mxu0 %v872_v17 }
  0xbb   : > { %v456_v19 = vpop.permute.xlu0 %455 }
  0xbe   : > { %v484_v21 = vpop.permute.xlu1 %483 }
  0xbf   : > { %vm488_vm1 = vcmp.eq.s32.totalorder %v1215_v20, %v484_v21  ;;  %v461_v27 = vpop.permute.xlu0 %460 }
  0xc2   : > { %v1218_v29 = vpop.permute.xlu1 %486 }
  0xc3   : > { %vm489_vm2 = vcmp.eq.s32.totalorder %v1215_v20, %v1218_v29 }
 0x11b   : > { %v444_v22 = vpop.f32.mrf.mxu0 }
 0x11c   : > { %v463_v24 = vmul.f32 %v456_v19, %v444_v22 }
 0x11d   : > { %v749_v25 = vpop.f32.mrf.mxu0 }
 0x11e   : > { %v472_v26 = vmul.f32 %v709_v23, %v463_v24 }
 0x11f   : > { %v447_v28 = vpop.f32.mrf.mxu0 }
 0x120   : > { %v464_v30 = vmul.f32 %v461_v27, %v447_v28  ;;  %v490_v31 = vsel %vm488_vm1, %v472_v26, 0.0 }
 0x121   : > { %492 = vadd.xlane.f32.xlu0 %v490_v31  ;;  %v750_v32 = vpop.f32.mrf.mxu0 }
 0x122   : > { %v473_v33 = vmul.f32 %v709_v23, %v464_v30 }
 0x124   : > { %v491_v34 = vsel %vm489_vm2, %v473_v33, 0.0 }
 0x125   : > { %494 = vadd.xlane.f32.xlu1 %v491_v34 }
 0x1aa   : > { %v493_v35 = vpop.xlane.xlu0 %492 }
 0x1ab   : > { %v496_v36 = vmul.f32 0.03125, %v493_v35 }
 0x1ad   : > { %v498_v37 = vmul.f32 %v496_v36, %v496_v36  ;;  %v711_v50 = vadd.f32 0.87758255, %v496_v36  ;;  %v518_v52 = vmul.f32 0.87758255, %v496_v36  ;;  %v713_v56 = vadd.f32 -0.23971277, %v496_v36 }
 0x1ae   : > { %v495_v38 = vpop.xlane.xlu1 %494 }
 0x1af   : > { %v500_v39 = vsub.f32 1.0, %v498_v37  ;;  %v497_v40 = vmul.f32 0.03125, %v495_v38  ;;  %vm526_vm6 = vcmp.gt.f32.partialorder %v711_v50, 0.0 }
 0x1b1   : > { %v502_v41 = vmax.f32 %v500_v39, 0.0  ;;  %v499_v42 = vmul.f32 %v497_v40, %v497_v40  ;;  %v712_v61 = vadd.f32 0.87758255, %v497_v40  ;;  %v519_v63 = vmul.f32 0.87758255, %v497_v40 }
 0x1b2   : > { %v714_v3 = vadd.f32 -0.23971277, %v497_v40 }
 0x1b3   : > { %873 = vrsqrt.f32 %v502_v41  ;;  %v501_v43 = vsub.f32 1.0, %v499_v42  ;;  %vm506_vm3 = vcmp.eq.f32.partialorder %v502_v41, inf  ;;  %v509_v47 = vand.u32 2147483648, %v502_v41 }
 0x1b4   : > { %vm508_vm4 = vcmp.eq.f32.partialorder %v502_v41, 0.0  ;;  %vm527_vm8 = vcmp.gt.f32.partialorder %v712_v61, 0.0 }
 0x1b5   : > { %v503_v44 = vmax.f32 %v501_v43, 0.0 }
 0x1b7   : > { %875 = vrsqrt.f32 %v503_v44  ;;  %vm513_vm5 = vcmp.eq.f32.partialorder %v503_v44, inf  ;;  %v516_v57 = vand.u32 2147483648, %v503_v44  ;;  %vm515_vm7 = vcmp.eq.f32.partialorder %v503_v44, 0.0 }
 0x1c0   : > { %v874_v45 = vpop.eup %873 }
 0x1c1   : > { %v505_v46 = vmul.f32 %v874_v45, %v502_v41 }
 0x1c3   : > { %v507_v48 = vsel %vm506_vm3, %v502_v41, %v505_v46 }
 0x1c4   : > { %v510_v49 = vsel %vm508_vm4, %v509_v47, %v507_v48  ;;  %v876_v51 = vpop.eup %875 }
 0x1c5   : > { %v520_v53 = vmul.f32 0.47942555, %v510_v49  ;;  %v512_v54 = vmul.f32 %v876_v51, %v503_v44 }
 0x1c7   : > { %v522_v55 = vsub.f32 %v518_v52, %v520_v53  ;;  %v514_v58 = vsel %vm513_vm5, %v503_v44, %v512_v54 }
 0x1c8   : > { %v517_v60 = vsel %vm515_vm7, %v516_v57, %v514_v58 }
 0x1c9   : > { %v530_v59 = vsel %vm526_vm6, %v522_v55, %v713_v56  ;;  %v521_v0 = vmul.f32 0.47942555, %v517_v60 }
 0x1ca   : > { %v532_v62 = vmul.f32 32.0, %v530_v59 }
 0x1cb   : > { %v523_v2 = vsub.f32 %v519_v63, %v521_v0 }
 0x1cc   : > { %v534_v1 = vsel %vm488_vm1, %v532_v62, %v472_v26 }
 0x1cd   : > { %536 = vst [vmem:[%s314_s25] sm:$0xff] %v534_v1  ;;  %v531_v4 = vsel %vm527_vm8, %v523_v2, %v714_v3 }
 0x1ce   : > { %v533_v5 = vmul.f32 32.0, %v531_v4 }
 0x1d0   : > { %v535_v6 = vsel %vm489_vm2, %v533_v5, %v473_v33 }
 0x1d1   : > { %537 = vst [vmem:[%s314_s25 + $0x8] sm:$0xff] %v535_v6 }
 0x1d2   : > { %918 = shalt.err (!%p915_p0)
}
 0x1d3   : > { %s919_s12 = scalar_lea.hbm %s1237_s10, 256  ;;  %s923_s14 = scalar_lea.hbm %s1311_s5, 1024 }
 0x1d4   : > { %p920_p3 = scmp.ne.s32.totalorder %s1237_s10, %s919_s12  ;;  %p924_p4 = scmp.lt.s32.totalorder %s1237_s10, %s1311_s5 }
 0x1d5   : > { %p925_p8 = scmp.lt.s32.totalorder %s923_s14, %s919_s12 }
 0x1d6   : > { %p921_p1 = pnand %p920_p3, %p1158_p13 }
 0x1d7   : > { %p926_p6 = por %p925_p8, %p924_p4 }
 0x1d8   : > { %p922_p5 = pneg %p921_p1 }
 0x1da   : > { %p927_p7 = pnand %p926_p6, %p922_p5 }
 0x1dc   : > { %930 = shalt.err (!%p927_p7)
}
 0x1dd   : > { %s1035_s30 = smov 128   ;;  %s1036_s25 = smov 256  }
 0x1de   : > { %s1037_s24 = smov 8  }
 0x1df   : > { %753 = dma.vmem_to_hbm [thread:$0]  (%p1158_p13), %s1239_s7, 256, %s1237_s10, %s1246_s8, %s1035_s30, %s1036_s25, %s1037_s24  }
 0x1e0 PF: > { %p764_p9 = scmp.ge.s32.totalorder %s1025_s28, 2  ;;  %s569_s6 = sand.u32 1, %s985_s18  }
 0x1e1   : > { %s570_s26 = scalar_lea.sflag [#allocation4], %s569_s6 }
 0x1e2   : > { %p760_p10 = pnand %p764_p9, %p1163_p2 }
 0x1e4   : > { %p761_p11 = pneg %p760_p10 }
 0x1e6   : > { %980 = dma.done.wait (%p761_p11), %s570_s26, 256  }
 0x1e7   : > { %982 = vsyncadd (%p761_p11), %s570_s26, 4294967040  ;;  %s21_s28 = sadd.s32 1, %s1025_s28   ;;  %s1328_s17 = sld [smem:[#allocation8_spill]] }
 0x1e8   : > { %p18_p12 = scmp.ge.s32.totalorder %s21_s28, 6   ;;  %s1329_s23 = sld [smem:[#allocation13_spill]] }
 0x1e9   : > { %s1330_s24 = sld [smem:[#allocation9_spill]]  ;;  %s1334_s18 = smov %s989_s19 }
 0x1ea   : > { %s1331_s25 = sld [smem:[#allocation10_spill]]  ;;  %s1335_s19 = smov %s993_s20 }
 0x1eb   : > { %s1332_s26 = sld [smem:[#allocation11_spill]]  ;;  %s1336_s20 = smov %s1156_s16 }
 0x1ec   : > { %s1333_s27 = sld [smem:[#allocation12_spill]]  ;;  %s1337_s21 = smov %s1001_s22 }
 0x1ed   : > { %s1338_s22 = smov %s1328_s17  ;;  %20 = sbr.rel (!%p18_p12) target bundleno = 9 (0x9), region = 97 }
 0x1f2   :  { %575 = vsyncpa [#allocation3], 1 }
 0x1f3   :  { %577 = vsyncpa [#allocation3 + $0x1], 1 }
 0x1f4   :  { %578 = vsyncpa [#allocation4], 1 }
 0x1f5   :  { %580 = vsyncpa [#allocation4 + $0x1], 1 }

</bundles_post_ra>
